<compile_context>
chip_gen: v7x
topology: tpu7x:2x2x1
jax: 0.10.0
libtpu: 0.0.40
codegen_flags: <defaults>
</compile_context>

<pallas_src>
import functools

import jax
import jax.numpy as jnp
from jax.experimental import pallas as pl
from jax.experimental.pallas import tpu as pltpu

_LANES = 128
_SUBLANES = 8
_MAX_TILE_ROWS = 4096     # 4096 x 128 f32 = 2 MiB per input block
_STRIP_ROWS = 256         # in-kernel strip size (bounds live VMEM temporaries)
_MIN_ROWS = 32            # covers sublane packing for f32 / bf16 / int8


def _round_down(x, m):
    return x // m * m


def _num_tensorcores():
    """TensorCores per JAX device: 2 for megacore v4/v5p and dual-TC v7x, else 1."""
    try:
        kind = jax.devices()[0].device_kind.lower()
    except Exception:
        return 1
    if "lite" in kind or "v5e" in kind or "v6e" in kind or "v6" in kind:
        return 1
    if "v4" in kind or "v5p" in kind or "v7" in kind or "7x" in kind:
        return 2
    return 1


def _wbce_kernel(x_ref, t_ref, num_ref, den_ref, *, pos_w, neg_w,
                 full_rows, rem, tile_rows, strip, steps):
    """Fold one (tile_rows, 128) block of the stream into per-split (1, 8, 128)
    f32 accumulators that stay VMEM-resident across the reduction axis."""
    i = pl.program_id(0)   # parallel split (one per TensorCore)
    j = pl.program_id(1)   # reduction step within this split

    @pl.when(j == 0)
    def _():
        num_ref[...] = jnp.zeros_like(num_ref)
        den_ref[...] = jnp.zeros_like(den_ref)

    # Global row of this block's first row. Uses the UNCLAMPED logical block id;
    # the DMA index_map is clamped, so duplicate (out-of-range) blocks and the
    # unspecified tail of a partial last block are masked out below.
    base_row = (i * steps + j) * tile_rows
    n_strips = tile_rows // strip

    def strip_body(s, carry):
        num_acc, den_acc = carry
        r0 = pl.multiple_of(s * strip, strip)
        x = x_ref[pl.ds(r0, strip), :].astype(jnp.float32)
        t = t_ref[pl.ds(r0, strip), :].astype(jnp.float32)

        row = base_row + r0 + jax.lax.broadcasted_iota(
            jnp.int32, (strip, _LANES), 0)
        if rem:
            lane = jax.lax.broadcasted_iota(jnp.int32, (strip, _LANES), 1)
            valid = (row < full_rows) | ((row == full_rows) & (lane < rem))
        else:
            valid = row < full_rows

        # Zero padding / unspecified tail BEFORE any arithmetic (NaN-safe).
        x = jnp.where(valid, x, 0.0)
        t = jnp.where(valid, t, 0.0)
        w = jnp.where(t == 1.0, jnp.float32(pos_w), jnp.float32(neg_w))
        w = jnp.where(valid, w, 0.0)

        # Numerically stable BCE with logits (same formula PyTorch uses):
        #   max(x, 0) - x*t + log1p(exp(-|x|))
        loss = jnp.maximum(x, 0.0) - x * t + jnp.log1p(jnp.exp(-jnp.abs(x)))

        num_acc = num_acc + jnp.sum(
            (loss * w).reshape(strip // _SUBLANES, _SUBLANES, _LANES), axis=0)
        den_acc = den_acc + jnp.sum(
            w.reshape(strip // _SUBLANES, _SUBLANES, _LANES), axis=0)
        return num_acc, den_acc

    zeros = jnp.zeros((_SUBLANES, _LANES), jnp.float32)
    num_acc, den_acc = jax.lax.fori_loop(
        0, n_strips, strip_body, (zeros, zeros), unroll=True)

    num_ref[...] += num_acc[None]
    den_ref[...] += den_acc[None]


@functools.partial(jax.jit, static_argnames=("positive_weight", "negative_weight"))
def weighted_bce_with_logits(inp, target, positive_weight=2, negative_weight=1):
    """Scalar weighted BCE-with-logits loss. inp/target: same shape (e.g. NCHW)."""
    assert inp.shape == target.shape
    pos_w = float(positive_weight)
    neg_w = float(negative_weight)

    n = inp.size
    full_rows, rem = divmod(n, _LANES)
    rows = full_rows + (1 if rem else 0)
    rows_presented = max(rows, _MIN_ROWS)
    pad = rows_presented * _LANES - n  # static

    # Pass native float dtypes straight through; upcast to f32 happens in-kernel
    # per strip (no extra wrapper-side astype pass over the HBM streams).
    x = inp.reshape(-1)
    t = target.reshape(-1)
    if not jnp.issubdtype(x.dtype, jnp.floating):
        x = x.astype(jnp.float32)
    if not jnp.issubdtype(t.dtype, jnp.floating):
        t = t.astype(jnp.float32)

    if pad:
        # Only taken when n is not a multiple of 128 or the input is tiny; the
        # padded tail contributes exactly zero (masked in-kernel).
        # TODO(synk): this rare ragged case still copies the stream once via jnp.pad.
        x = jnp.pad(x, (0, pad))
        t = jnp.pad(t, (0, pad))
    x = x.reshape(rows_presented, _LANES)
    t = t.reshape(rows_presented, _LANES)

    # Tile selection: biggest lane-aligned block (<= array rows) that divides
    # evenly into 256-row strips for the in-kernel strip loop.
    if rows_presented >= _STRIP_ROWS:
        tile_rows = min(_MAX_TILE_ROWS, _round_down(rows_presented, _STRIP_ROWS))
        strip = _STRIP_ROWS
    else:
        tile_rows = _round_down(rows_presented, _MIN_ROWS)
        strip = tile_rows

    total_blocks = pl.cdiv(rows_presented, tile_rows)
    num_splits = max(1, min(_num_tensorcores(), total_blocks))
    steps = pl.cdiv(total_blocks, num_splits)
    last_block = total_blocks - 1

    # Clamp duplicate (out-of-range) block ids to the last valid block; their
    # contribution is masked to zero in-kernel via the global row index.
    in_spec = pl.BlockSpec(
        (tile_rows, _LANES),
        lambda i, j: (jnp.minimum(i * steps + j, last_block), 0))
    out_spec = pl.BlockSpec((1, _SUBLANES, _LANES), lambda i, j: (i, 0, 0))

    kernel = functools.partial(
        _wbce_kernel, pos_w=pos_w, neg_w=neg_w, full_rows=full_rows, rem=rem,
        tile_rows=tile_rows, strip=strip, steps=steps)

    num_p, den_p = pl.pallas_call(
        kernel,
        out_shape=(
            jax.ShapeDtypeStruct((num_splits, _SUBLANES, _LANES), jnp.float32),
            jax.ShapeDtypeStruct((num_splits, _SUBLANES, _LANES), jnp.float32),
        ),
        grid_spec=pltpu.PrefetchScalarGridSpec(
            num_scalar_prefetch=0,
            grid=(num_splits, steps),
            in_specs=[in_spec, in_spec],
            out_specs=[out_spec, out_spec],
        ),
        compiler_params=pltpu.CompilerParams(
            dimension_semantics=("parallel", "arbitrary"),
            vmem_limit_bytes=32 * 1024 * 1024,
        ),
    )(x, t)

    return jnp.sum(num_p) / jnp.sum(den_p)


def _reference(inp, target, positive_weight=2, negative_weight=1):
    x = inp.astype(jnp.float32)
    t = target.astype(jnp.float32)
    w = jnp.where(t == 1.0, float(positive_weight), float(negative_weight))
    loss = jnp.maximum(x, 0.0) - x * t + jnp.log1p(jnp.exp(-jnp.abs(x)))
    return jnp.sum(loss * w) / jnp.sum(w)


if __name__ == "__main__":
    key = jax.random.PRNGKey(0)
    k1, k2 = jax.random.split(key)

    # logits (input) and binary targets, NCHW
    shape = (2, 4, 16, 16)
    logits = jax.random.normal(k1, shape, dtype=jnp.float32)
    target = jax.random.bernoulli(k2, p=0.3, shape=shape).astype(jnp.float32)

    out = weighted_bce_with_logits(
        logits, target, positive_weight=2, negative_weight=1
    )
    out = jax.block_until_ready(out)

    ref = _reference(logits, target, 2, 1)
    assert jnp.allclose(out, ref, rtol=1e-5, atol=1e-5), (out, ref)
    print("KERNEL_OK")
</pallas_src>

<mosaic_0001>
module attributes {stable_mosaic.version = 11 : i64} {
  func.func @_wbce_kernel(%arg0: i32, %arg1: i32, %arg2: memref<32x128xf32, #tpu.memory_space<vmem>>, %arg3: memref<32x128xf32, #tpu.memory_space<vmem>>, %arg4: memref<1x8x128xf32, #tpu.memory_space<vmem>>, %arg5: memref<1x8x128xf32, #tpu.memory_space<vmem>>) attributes {dimension_semantics = [#tpu.dimension_semantics<parallel>, #tpu.dimension_semantics<arbitrary>], iteration_bounds = array<i64: 1, 1>, scalar_prefetch = 0 : i64, scratch_operands = 0 : i64, tpu.core_type = #tpu.core_type<tc>, window_params = [{transform_indices = @transform_0, window_bounds = array<i64: 32, 128>}, {transform_indices = @transform_1, window_bounds = array<i64: 32, 128>}, {transform_indices = @transform_2, window_bounds = array<i64: 1, 8, 128>}, {transform_indices = @transform_3, window_bounds = array<i64: 1, 8, 128>}]} {
    %c0_i32 = arith.constant 0 : i32
    %0 = arith.cmpi eq, %arg1, %c0_i32 : i32
    %1 = arith.extui %0 : i1 to i32
    %c0_i32_0 = arith.constant 0 : i32
    %2 = arith.cmpi ne, %1, %c0_i32_0 : i32
    scf.if %2 {
      %cst_27 = arith.constant 0.000000e+00 : f32
      %55 = vector.broadcast %cst_27 : f32 to vector<1x8x128xf32>
      %c0_28 = arith.constant 0 : index
      %c0_29 = arith.constant 0 : index
      %c0_30 = arith.constant 0 : index
      %56 = vector.load %arg4[%c0_28, %c0_29, %c0_30] : memref<1x8x128xf32, #tpu.memory_space<vmem>>, vector<1x8x128xf32>
      tpu.vector_store %arg4[%c0_28, %c0_29, %c0_30], %55 {strides = array<i32>} : memref<1x8x128xf32, #tpu.memory_space<vmem>>, vector<1x8x128xf32>,
      %cst_31 = arith.constant 0.000000e+00 : f32
      %57 = vector.broadcast %cst_31 : f32 to vector<1x8x128xf32>
      %c0_32 = arith.constant 0 : index
      %c0_33 = arith.constant 0 : index
      %c0_34 = arith.constant 0 : index
      %58 = vector.load %arg5[%c0_32, %c0_33, %c0_34] : memref<1x8x128xf32, #tpu.memory_space<vmem>>, vector<1x8x128xf32>
      tpu.vector_store %arg5[%c0_32, %c0_33, %c0_34], %57 {strides = array<i32>} : memref<1x8x128xf32, #tpu.memory_space<vmem>>, vector<1x8x128xf32>,
    } else {
    }
    %c1_i32 = arith.constant 1 : i32
    %3 = arith.muli %arg0, %c1_i32 : i32
    %4 = arith.addi %3, %arg1 : i32
    %c32_i32 = arith.constant 32 : i32
    %5 = arith.muli %4, %c32_i32 : i32
    %cst = arith.constant 0.000000e+00 : f32
    %6 = vector.broadcast %cst : f32 to vector<8x128xf32>
    %c0_i32_1 = arith.constant 0 : i32
    %c32_i32_2 = arith.constant 32 : i32
    %7 = arith.muli %c0_i32_1, %c32_i32_2 : i32
    %8 = tpu.assume_multiple %7, 32 : i32
    %9 = arith.index_cast %8 : i32 to index
    %c0 = arith.constant 0 : index
    %10 = vector.load %arg2[%9, %c0] : memref<32x128xf32, #tpu.memory_space<vmem>>, vector<32x128xf32>
    %11 = arith.index_cast %8 : i32 to index
    %c0_3 = arith.constant 0 : index
    %12 = vector.load %arg3[%11, %c0_3] : memref<32x128xf32, #tpu.memory_space<vmem>>, vector<32x128xf32>
    %13 = arith.addi %5, %8 : i32
    %14 = tpu.iota {dimensions = array<i32: 0>} : vector<32x128xi32>
    %15 = vector.broadcast %13 : i32 to vector<32x128xi32>
    %16 = arith.addi %15, %14 : vector<32x128xi32>
    %c16_i32 = arith.constant 16 : i32
    %17 = vector.broadcast %c16_i32 : i32 to vector<32x128xi32>
    %18 = arith.cmpi slt, %16, %17 : vector<32x128xi32>
    %cst_4 = arith.constant 0.000000e+00 : f32
    %19 = vector.broadcast %cst_4 : f32 to vector<32x128xf32>
    %20 = arith.select %18, %10, %19 : vector<32x128xi1>, vector<32x128xf32>
    %cst_5 = arith.constant 0.000000e+00 : f32
    %21 = vector.broadcast %cst_5 : f32 to vector<32x128xf32>
    %22 = arith.select %18, %12, %21 : vector<32x128xi1>, vector<32x128xf32>
    %cst_6 = arith.constant 1.000000e+00 : f32
    %23 = vector.broadcast %cst_6 : f32 to vector<32x128xf32>
    %24 = arith.cmpf oeq, %22, %23 : vector<32x128xf32>
    %cst_7 = arith.constant 2.000000e+00 : f32
    %cst_8 = arith.constant 1.000000e+00 : f32
    %25 = vector.broadcast %cst_7 : f32 to vector<32x128xf32>
    %26 = vector.broadcast %cst_8 : f32 to vector<32x128xf32>
    %27 = arith.select %24, %25, %26 : vector<32x128xi1>, vector<32x128xf32>
    %cst_9 = arith.constant 0.000000e+00 : f32
    %28 = vector.broadcast %cst_9 : f32 to vector<32x128xf32>
    %29 = arith.select %18, %27, %28 : vector<32x128xi1>, vector<32x128xf32>
    %cst_10 = arith.constant 0.000000e+00 : f32
    %30 = vector.broadcast %cst_10 : f32 to vector<32x128xf32>
    %31 = arith.maximumf %20, %30 : vector<32x128xf32>
    %32 = arith.mulf %20, %22 : vector<32x128xf32>
    %33 = arith.subf %31, %32 : vector<32x128xf32>
    %34 = math.absf %20 : vector<32x128xf32>
    %cst_11 = arith.constant 0.000000e+00 : f32
    %35 = vector.broadcast %cst_11 : f32 to vector<32x128xf32>
    %36 = arith.subf %35, %34 : vector<32x128xf32>
    %37 = math.exp %36 : vector<32x128xf32>
    %38 = math.log1p %37 : vector<32x128xf32>
    %39 = arith.addf %33, %38 : vector<32x128xf32>
    %40 = arith.mulf %39, %29 : vector<32x128xf32>
    %41 = vector.shape_cast %40 : vector<32x128xf32> to vector<4x8x128xf32>
    %cst_12 = arith.constant dense<0.000000e+00> : vector<8x128xf32>
    %42 = vector.multi_reduction <add>, %41, %cst_12 [0] : vector<4x8x128xf32> to vector<8x128xf32>
    %43 = arith.addf %6, %42 : vector<8x128xf32>
    %44 = vector.shape_cast %29 : vector<32x128xf32> to vector<4x8x128xf32>
    %cst_13 = arith.constant dense<0.000000e+00> : vector<8x128xf32>
    %45 = vector.multi_reduction <add>, %44, %cst_13 [0] : vector<4x8x128xf32> to vector<8x128xf32>
    %46 = arith.addf %6, %45 : vector<8x128xf32>
    %c1_i32_14 = arith.constant 1 : i32
    %c0_15 = arith.constant 0 : index
    %c0_16 = arith.constant 0 : index
    %c0_17 = arith.constant 0 : index
    %47 = vector.load %arg4[%c0_15, %c0_16, %c0_17] : memref<1x8x128xf32, #tpu.memory_space<vmem>>, vector<1x8x128xf32>
    %48 = vector.shape_cast %43 : vector<8x128xf32> to vector<1x8x128xf32>
    %49 = arith.addf %47, %48 : vector<1x8x128xf32>
    %c0_18 = arith.constant 0 : index
    %c0_19 = arith.constant 0 : index
    %c0_20 = arith.constant 0 : index
    %50 = vector.load %arg4[%c0_18, %c0_19, %c0_20] : memref<1x8x128xf32, #tpu.memory_space<vmem>>, vector<1x8x128xf32>
    tpu.vector_store %arg4[%c0_18, %c0_19, %c0_20], %49 {strides = array<i32>} : memref<1x8x128xf32, #tpu.memory_space<vmem>>, vector<1x8x128xf32>,
    %c0_21 = arith.constant 0 : index
    %c0_22 = arith.constant 0 : index
    %c0_23 = arith.constant 0 : index
    %51 = vector.load %arg5[%c0_21, %c0_22, %c0_23] : memref<1x8x128xf32, #tpu.memory_space<vmem>>, vector<1x8x128xf32>
    %52 = vector.shape_cast %46 : vector<8x128xf32> to vector<1x8x128xf32>
    %53 = arith.addf %51, %52 : vector<1x8x128xf32>
    %c0_24 = arith.constant 0 : index
    %c0_25 = arith.constant 0 : index
    %c0_26 = arith.constant 0 : index
    %54 = vector.load %arg5[%c0_24, %c0_25, %c0_26] : memref<1x8x128xf32, #tpu.memory_space<vmem>>, vector<1x8x128xf32>
    tpu.vector_store %arg5[%c0_24, %c0_25, %c0_26], %53 {strides = array<i32>} : memref<1x8x128xf32, #tpu.memory_space<vmem>>, vector<1x8x128xf32>,
    return
  }
  func.func @transform_0(%arg0: i32, %arg1: i32) -> (i32, i32) {
    %c1_i32 = arith.constant 1 : i32
    %0 = arith.muli %arg0, %c1_i32 : i32
    %1 = arith.addi %0, %arg1 : i32
    %c0_i32 = arith.constant 0 : i32
    %2 = arith.minsi %1, %c0_i32 : i32
    %c0_i32_0 = arith.constant 0 : i32
    %c0_i32_1 = arith.constant 0 : i32
    return %2, %c0_i32_0 : i32, i32
  }
  func.func @transform_1(%arg0: i32, %arg1: i32) -> (i32, i32) {
    %c1_i32 = arith.constant 1 : i32
    %0 = arith.muli %arg0, %c1_i32 : i32
    %1 = arith.addi %0, %arg1 : i32
    %c0_i32 = arith.constant 0 : i32
    %2 = arith.minsi %1, %c0_i32 : i32
    %c0_i32_0 = arith.constant 0 : i32
    %c0_i32_1 = arith.constant 0 : i32
    return %2, %c0_i32_0 : i32, i32
  }
  func.func @transform_2(%arg0: i32, %arg1: i32) -> (i32, i32, i32) {
    %c0_i32 = arith.constant 0 : i32
    %c0_i32_0 = arith.constant 0 : i32
    %c0_i32_1 = arith.constant 0 : i32
    return %arg0, %c0_i32, %c0_i32_0 : i32, i32, i32
  }
  func.func @transform_3(%arg0: i32, %arg1: i32) -> (i32, i32, i32) {
    %c0_i32 = arith.constant 0 : i32
    %c0_i32_0 = arith.constant 0 : i32
    %c0_i32_1 = arith.constant 0 : i32
    return %arg0, %c0_i32, %c0_i32_0 : i32, i32, i32
  }
}

</mosaic_0001>

<bundles_post_ra>
// kernel: weighted_bce_with_logits.1
= control target key start
LH: loop header
LB: loop body
LE: loop exit
PB: predicated region body
PF: predicated region fallthrough
CT: control target
= control target key end

     0   :  { %v244_v5 = vmov 1.0   ;;  %s283_s0 = inlined_call_operand.vmem [shape: f32[32,128], index: 0, kind: input, shape index: {}]   ;;  %s284_s1 = inlined_call_operand.vmem [shape: f32[32,128], index: 1, kind: input, shape index: {}]   ;;  %s285_s3 = inlined_call_operand.vmem [shape: f32[1,8,128], index: 3, kind: output, shape index: {1}]   ;;  %s286_s2 = inlined_call_operand.vmem [shape: f32[1,8,128], index: 2, kind: output, shape index: {0}]  }
   0x1   :  { %v85_v0 = vld [vmem:[%s283_s0] sm:$0xff]  ;;  %v86_v1 = vld [vmem:[%s283_s0 + $0x8] sm:$0xff] }
   0x2   :  { %v89_v2 = vld [vmem:[%s284_s1] sm:$0xff]  ;;  %v90_v3 = vld [vmem:[%s284_s1 + $0x8] sm:$0xff]  ;;  %v140_v4 = vand.u32 2147483647, %v85_v0  ;;  %v141_v8 = vand.u32 2147483647, %v86_v1 }
   0x3   :  { %vm116_vm0 = vcmp.eq.f32.partialorder %v89_v2, 1.0  ;;  %vm117_vm1 = vcmp.eq.f32.partialorder %v90_v3, 1.0  ;;  %v128_v21 = vmax.f32 %v85_v0, 0.0  ;;  %v132_v22 = vmul.f32 %v89_v2, %v85_v0 }
   0x4   :  { %v120_v6 = vsel %vm116_vm0, 2.0, %v244_v5  ;;  %v121_v7 = vsel %vm117_vm1, 2.0, %v244_v5  ;;  %v144_v9 = vsub.f32 0.0, %v140_v4  ;;  %v145_v11 = vsub.f32 0.0, %v141_v8 }
   0x5   :  { %v204_v10 = vadd.f32 %v121_v7, %v120_v6  ;;  %v129_v25 = vmax.f32 %v86_v1, 0.0  ;;  %v133_v26 = vmul.f32 %v90_v3, %v86_v1  ;;  %v136_v30 = vsub.f32 %v128_v21, %v132_v22 }
   0x6   :  { %v148_v12 = vmul.f32 1.442695, %v144_v9  ;;  %v150_v13 = vmul.f32 1.442695, %v145_v11 }
   0x7   :  { %213 = vst [vmem:[%s285_s3] sm:$0xff] %v204_v10  ;;  %v137_v33 = vsub.f32 %v129_v25, %v133_v26 }
   0x8   :  { %236 = vpow2.f32 %v148_v12 }
   0x9   :  { %238 = vpow2.f32 %v150_v13 }
  0x12   :  { %v237_v14 = vpop.eup %236 }
  0x13   :  { %v239_v15 = vpop.eup %238  ;;  %v156_v16 = vadd.f32 1.0, %v237_v14  ;;  %v159_v18 = vmul.f32 -0.5, %v237_v14  ;;  %v162_v23 = vand.u32 2147483647, %v237_v14 }
  0x14   :  { %v165_v17 = vadd.f32 1.0, %v239_v15  ;;  %v168_v19 = vmul.f32 -0.5, %v239_v15  ;;  %v171_v27 = vand.u32 2147483647, %v239_v15 }
  0x15   :  { %240 = vlog2.f32 %v156_v16  ;;  %v160_v20 = vadd.f32 1.0, %v159_v18  ;;  %vm163_vm2 = vcmp.lt.f32.partialorder %v162_v23, 0.0004427343 }
  0x16   :  { %242 = vlog2.f32 %v165_v17  ;;  %v169_v24 = vadd.f32 1.0, %v168_v19  ;;  %vm172_vm3 = vcmp.lt.f32.partialorder %v171_v27, 0.0004427343 }
  0x17   :  { %v161_v28 = vmul.f32 %v237_v14, %v160_v20 }
  0x18   :  { %v170_v31 = vmul.f32 %v239_v15, %v169_v24 }
  0x1f   :  { %v241_v29 = vpop.eup %240 }
  0x20   :  { %v243_v32 = vpop.eup %242  ;;  %v158_v34 = vmul.f32 0.6931472, %v241_v29 }
  0x21   :  { %v167_v35 = vmul.f32 0.6931472, %v243_v32 }
  0x22   :  { %v164_v36 = vsel %vm163_vm2, %v161_v28, %v158_v34 }
  0x23   :  { %v173_v37 = vsel %vm172_vm3, %v170_v31, %v167_v35  ;;  %v192_v38 = vadd.f32 %v164_v36, %v136_v30 }
  0x24   :  { %v193_v39 = vadd.f32 %v173_v37, %v137_v33 }
  0x25   :  { %v196_v40 = vmul.f32 %v192_v38, %v120_v6 }
  0x26   :  { %v197_v41 = vmul.f32 %v193_v39, %v121_v7 }
  0x28   :  { %v200_v42 = vadd.f32 %v197_v41, %v196_v40 }
  0x2a   :  { %210 = vst [vmem:[%s286_s2] sm:$0xff] %v200_v42 }

</bundles_post_ra>
